<compile_context>
chip_gen: v5e
topology: v5e:2x2
jax: 0.10.0
libtpu: 0.0.40
codegen_flags: <defaults>
</compile_context>

<pallas_src>
import functools
import numpy as np
import jax
import jax.numpy as jnp
from jax.experimental import pallas as pl
from jax.experimental.pallas import tpu as pltpu


def _mlp_kernel_t(x_ref,                   # (D_in, N)   x, transposed
                  w1_ref, b1_ref,          # (H, D_in), (H, 1)
                  w2_ref, b2_ref,          # (H, H),    (H, 1)
                  w3_ref, b3_ref,          # (H, H),    (H, 1)
                  w4_ref, b4_ref,          # (H, 1),    (1, 1)   (D_out == 1)
                  o_ref,                   # (1, N)     output, transposed
                  *, scale, d_in):
    x = x_ref[...]                                        # (D_in, N)

    # ---- Layer 1 on the VPU: K = D_in is tiny, so avoid an MXU pass. ----
    pre1 = b1_ref[...]                                    # (H, 1) -> broadcasts
    for d in range(d_in):                                 # static, unrolled
        pre1 = pre1 + w1_ref[:, d:d + 1] * x[d:d + 1, :]  # (H,1)*(1,N) -> (H,N)
    h1 = jnp.tanh(scale * pre1)                           # (H, N)

    # ---- Layers 2/3 on the MXU: real (H,H) x (H,N) contractions. ----
    h2 = jnp.tanh(scale * (jnp.dot(w2_ref[...], h1,
                                   preferred_element_type=jnp.float32)
                           + b2_ref[...]))                # (H, N)
    h3 = jnp.tanh(scale * (jnp.dot(w3_ref[...], h2,
                                   preferred_element_type=jnp.float32)
                           + b3_ref[...]))                # (H, N)

    # ---- Layer 4 (D_out == 1) as VPU multiply + sublane reduce (XLU). ----
    y = jnp.sum(w4_ref[...] * h3, axis=0, keepdims=True) + b4_ref[...]   # (1, N)
    o_ref[...] = (scale * y).astype(o_ref.dtype)


def particular_forward(x, params, scale):
    """x: [N, D_in] f32.  params: weights stored as [in, out], biases (1, F)."""
    N, D_in = x.shape
    H = params["w1"].shape[1]
    D_out = params["w4"].shape[1]
    assert D_out == 1, "kernel's lane-dense layer-4 path is specialized to D_out == 1"

    # Layout plumbing (outside the kernel): present everything in transposed,
    # lane-dense form so N lives on the lane axis inside the kernel.
    x_t = x.T                    # (D_in, N)
    w1_t = params["w1"].T        # (H, D_in)
    b1_c = params["b1"].T        # (H, 1)
    w2_t = params["w2"].T        # (H, H)
    b2_c = params["b2"].T        # (H, 1)
    w3_t = params["w3"].T        # (H, H)
    b3_c = params["b3"].T        # (H, 1)
    w4_c = params["w4"]          # (H, 1)  -- column form for the VPU reduce
    b4 = params["b4"]            # (1, 1)

    kernel = functools.partial(_mlp_kernel_t, scale=float(scale), d_in=D_in)

    # Single grid step: everything resident in VMEM (< 1 MiB on all of v5e/v6e/v7x).
    # NOTE(v7x): to use both TensorCores one could split the lane (N) axis into
    # two 128-aligned blocks with dimension_semantics=("parallel",); at these
    # sizes a single step on one core is already overhead-free, so keep grid=(1,).
    out_t = pl.pallas_call(
        kernel,
        out_shape=jax.ShapeDtypeStruct((D_out, N), jnp.float32),
        grid_spec=pltpu.PrefetchScalarGridSpec(
            num_scalar_prefetch=0,
            grid=(1,),
            in_specs=[
                pl.BlockSpec((D_in, N),  lambda i: (0, 0)),   # x^T
                pl.BlockSpec((H, D_in),  lambda i: (0, 0)),   # w1^T
                pl.BlockSpec((H, 1),     lambda i: (0, 0)),   # b1
                pl.BlockSpec((H, H),     lambda i: (0, 0)),   # w2^T
                pl.BlockSpec((H, 1),     lambda i: (0, 0)),   # b2
                pl.BlockSpec((H, H),     lambda i: (0, 0)),   # w3^T
                pl.BlockSpec((H, 1),     lambda i: (0, 0)),   # b3
                pl.BlockSpec((H, D_out), lambda i: (0, 0)),   # w4 (column)
                pl.BlockSpec((1, D_out), lambda i: (0, 0)),   # b4
            ],
            out_specs=pl.BlockSpec((D_out, N), lambda i: (0, 0)),
        ),
        compiler_params=pltpu.CompilerParams(
            dimension_semantics=("arbitrary",)),
    )(x_t, w1_t, b1_c, w2_t, b2_c, w3_t, b3_c, w4_c, b4)

    return out_t.T               # back to (N, D_out)


def init_params(key, D_in, H, D_out):
    """Deterministic init mirroring the PyTorch normal_ initializers.
    Weights are stored [in, out]; biases are (1, F)."""
    ks = jax.random.split(key, 8)

    def normal(k, shape, std):
        return (std * jax.random.normal(k, shape)).astype(jnp.float32)

    return {
        "w1": normal(ks[0], (D_in, H),  np.sqrt(2.0 / (D_in + H))),
        "w2": normal(ks[1], (H, H),     np.sqrt(2.0 / (H + H))),
        "w3": normal(ks[2], (H, H),     np.sqrt(2.0 / (H + H))),
        "w4": normal(ks[3], (H, D_out), np.sqrt(2.0 / (H + D_out))),
        "b1": normal(ks[4], (1, H), 1.0),
        "b2": normal(ks[5], (1, H), 1.0),
        "b3": normal(ks[6], (1, H), 1.0),
        "b4": normal(ks[7], (1, D_out), 1.0),
    }


def reference_forward(x, params, scale):
    s = jnp.float32(scale)
    h1 = jnp.tanh(s * (x @ params["w1"] + params["b1"]))
    h2 = jnp.tanh(s * (h1 @ params["w2"] + params["b2"]))
    h3 = jnp.tanh(s * (h2 @ params["w3"] + params["b3"]))
    return s * (h3 @ params["w4"] + params["b4"])


if __name__ == "__main__":
    # Small shapes consistent with the module: point-cloud input (x, y) -> scalar.
    # N = 128 so the transposed output (1, N) is exactly one lane-dense vreg row.
    N, D_in, H, D_out = 128, 2, 32, 1

    key = jax.random.PRNGKey(0)
    kx, kp = jax.random.split(key)
    x = jax.random.uniform(kx, (N, D_in), jnp.float32, minval=-1.0, maxval=1.0)
    params = init_params(kp, D_in, H, D_out)

    # n = 1 / a1  =>  n * a1 == 1.0; folded into the kernel as a static constant.
    a1 = jnp.float32(0.1)
    n = jnp.float32(1.0) / a1
    scale = float(n * a1)

    out = particular_forward(x, params, scale)
    out = jax.block_until_ready(out)

    ref = reference_forward(x, params, scale)
    np.testing.assert_allclose(np.asarray(out), np.asarray(ref),
                               rtol=1e-5, atol=1e-5)

    print("KERNEL_OK")
</pallas_src>

<mosaic_0001>
module attributes {stable_mosaic.version = 11 : i64} {
  func.func @_mlp_kernel_t(%arg0: i32, %arg1: memref<2x128xf32, #tpu.memory_space<vmem>>, %arg2: memref<32x2xf32, #tpu.memory_space<vmem>>, %arg3: memref<32x1xf32, #tpu.memory_space<vmem>>, %arg4: memref<32x32xf32, #tpu.memory_space<vmem>>, %arg5: memref<32x1xf32, #tpu.memory_space<vmem>>, %arg6: memref<32x32xf32, #tpu.memory_space<vmem>>, %arg7: memref<32x1xf32, #tpu.memory_space<vmem>>, %arg8: memref<32x1xf32, #tpu.memory_space<vmem>>, %arg9: memref<1x1xf32, #tpu.memory_space<vmem>>, %arg10: memref<1x128xf32, #tpu.memory_space<vmem>>) attributes {dimension_semantics = [#tpu.dimension_semantics<arbitrary>], iteration_bounds = array<i64: 1>, scalar_prefetch = 0 : i64, scratch_operands = 0 : i64, tpu.core_type = #tpu.core_type<tc>, window_params = [{pipeline_mode = #tpu.pipeline_mode<synchronous>, transform_indices = @transform_0, window_bounds = array<i64: 2, 128>}, {pipeline_mode = #tpu.pipeline_mode<synchronous>, transform_indices = @transform_1, window_bounds = array<i64: 32, 2>}, {pipeline_mode = #tpu.pipeline_mode<synchronous>, transform_indices = @transform_2, window_bounds = array<i64: 32, 1>}, {pipeline_mode = #tpu.pipeline_mode<synchronous>, transform_indices = @transform_3, window_bounds = array<i64: 32, 32>}, {pipeline_mode = #tpu.pipeline_mode<synchronous>, transform_indices = @transform_4, window_bounds = array<i64: 32, 1>}, {pipeline_mode = #tpu.pipeline_mode<synchronous>, transform_indices = @transform_5, window_bounds = array<i64: 32, 32>}, {pipeline_mode = #tpu.pipeline_mode<synchronous>, transform_indices = @transform_6, window_bounds = array<i64: 32, 1>}, {pipeline_mode = #tpu.pipeline_mode<synchronous>, transform_indices = @transform_7, window_bounds = array<i64: 32, 1>}, {pipeline_mode = #tpu.pipeline_mode<synchronous>, transform_indices = @transform_8, window_bounds = array<i64: 1, 1>}, {pipeline_mode = #tpu.pipeline_mode<synchronous>, transform_indices = @transform_9, window_bounds = array<i64: 1, 128>}]} {
    %c0 = arith.constant 0 : index
    %c0_0 = arith.constant 0 : index
    %0 = vector.load %arg1[%c0, %c0_0] : memref<2x128xf32, #tpu.memory_space<vmem>>, vector<2x128xf32>
    %c0_1 = arith.constant 0 : index
    %c0_2 = arith.constant 0 : index
    %1 = vector.load %arg3[%c0_1, %c0_2] : memref<32x1xf32, #tpu.memory_space<vmem>>, vector<32x1xf32>
    %c0_3 = arith.constant 0 : index
    %c0_4 = arith.constant 0 : index
    %2 = vector.load %arg2[%c0_3, %c0_4] : memref<32x2xf32, #tpu.memory_space<vmem>>, vector<32x1xf32>
    %3 = vector.extract_strided_slice %0 {offsets = [0, 0], sizes = [1, 128], strides = [1, 1]} : vector<2x128xf32> to vector<1x128xf32>
    %4 = vector.broadcast %2 : vector<32x1xf32> to vector<32x128xf32>
    %5 = vector.broadcast %3 : vector<1x128xf32> to vector<32x128xf32>
    %6 = arith.mulf %4, %5 : vector<32x128xf32>
    %7 = vector.broadcast %1 : vector<32x1xf32> to vector<32x128xf32>
    %8 = arith.addf %7, %6 : vector<32x128xf32>
    %c0_5 = arith.constant 0 : index
    %c1 = arith.constant 1 : index
    %9 = vector.load %arg2[%c0_5, %c1] : memref<32x2xf32, #tpu.memory_space<vmem>>, vector<32x1xf32>
    %10 = vector.extract_strided_slice %0 {offsets = [1, 0], sizes = [1, 128], strides = [1, 1]} : vector<2x128xf32> to vector<1x128xf32>
    %11 = vector.broadcast %9 : vector<32x1xf32> to vector<32x128xf32>
    %12 = vector.broadcast %10 : vector<1x128xf32> to vector<32x128xf32>
    %13 = arith.mulf %11, %12 : vector<32x128xf32>
    %14 = arith.addf %8, %13 : vector<32x128xf32>
    %cst = arith.constant 1.000000e+00 : f32
    %15 = vector.broadcast %cst : f32 to vector<32x128xf32>
    %16 = arith.mulf %15, %14 : vector<32x128xf32>
    %17 = math.tanh %16 : vector<32x128xf32>
    %c0_6 = arith.constant 0 : index
    %c0_7 = arith.constant 0 : index
    %18 = vector.load %arg4[%c0_6, %c0_7] : memref<32x32xf32, #tpu.memory_space<vmem>>, vector<32x32xf32>
    %cst_8 = arith.constant dense<0.000000e+00> : vector<32x128xf32>
    %19 = tpu.matmul %18, %17, %cst_8 {dimension_numbers = #tpu.dot_dimension_numbers<[1], [0], [0], [1], [0, 0, 1, 1], [], []>} : vector<32x32xf32>, vector<32x128xf32>, vector<32x128xf32> -> vector<32x128xf32>
    %c0_9 = arith.constant 0 : index
    %c0_10 = arith.constant 0 : index
    %20 = vector.load %arg5[%c0_9, %c0_10] : memref<32x1xf32, #tpu.memory_space<vmem>>, vector<32x1xf32>
    %21 = vector.broadcast %20 : vector<32x1xf32> to vector<32x128xf32>
    %22 = arith.addf %19, %21 : vector<32x128xf32>
    %cst_11 = arith.constant 1.000000e+00 : f32
    %23 = vector.broadcast %cst_11 : f32 to vector<32x128xf32>
    %24 = arith.mulf %23, %22 : vector<32x128xf32>
    %25 = math.tanh %24 : vector<32x128xf32>
    %c0_12 = arith.constant 0 : index
    %c0_13 = arith.constant 0 : index
    %26 = vector.load %arg6[%c0_12, %c0_13] : memref<32x32xf32, #tpu.memory_space<vmem>>, vector<32x32xf32>
    %cst_14 = arith.constant dense<0.000000e+00> : vector<32x128xf32>
    %27 = tpu.matmul %26, %25, %cst_14 {dimension_numbers = #tpu.dot_dimension_numbers<[1], [0], [0], [1], [0, 0, 1, 1], [], []>} : vector<32x32xf32>, vector<32x128xf32>, vector<32x128xf32> -> vector<32x128xf32>
    %c0_15 = arith.constant 0 : index
    %c0_16 = arith.constant 0 : index
    %28 = vector.load %arg7[%c0_15, %c0_16] : memref<32x1xf32, #tpu.memory_space<vmem>>, vector<32x1xf32>
    %29 = vector.broadcast %28 : vector<32x1xf32> to vector<32x128xf32>
    %30 = arith.addf %27, %29 : vector<32x128xf32>
    %cst_17 = arith.constant 1.000000e+00 : f32
    %31 = vector.broadcast %cst_17 : f32 to vector<32x128xf32>
    %32 = arith.mulf %31, %30 : vector<32x128xf32>
    %33 = math.tanh %32 : vector<32x128xf32>
    %c0_18 = arith.constant 0 : index
    %c0_19 = arith.constant 0 : index
    %34 = vector.load %arg8[%c0_18, %c0_19] : memref<32x1xf32, #tpu.memory_space<vmem>>, vector<32x1xf32>
    %35 = vector.broadcast %34 : vector<32x1xf32> to vector<32x128xf32>
    %36 = arith.mulf %35, %33 : vector<32x128xf32>
    %cst_20 = arith.constant dense<0.000000e+00> : vector<128xf32>
    %37 = vector.multi_reduction <add>, %36, %cst_20 [0] : vector<32x128xf32> to vector<128xf32>
    %38 = vector.shape_cast %37 : vector<128xf32> to vector<1x128xf32>
    %c0_21 = arith.constant 0 : index
    %c0_22 = arith.constant 0 : index
    %39 = vector.load %arg9[%c0_21, %c0_22] : memref<1x1xf32, #tpu.memory_space<vmem>>, vector<1x1xf32>
    %40 = vector.broadcast %39 : vector<1x1xf32> to vector<1x128xf32>
    %41 = arith.addf %38, %40 : vector<1x128xf32>
    %cst_23 = arith.constant 1.000000e+00 : f32
    %42 = vector.broadcast %cst_23 : f32 to vector<1x128xf32>
    %43 = arith.mulf %42, %41 : vector<1x128xf32>
    %c0_24 = arith.constant 0 : index
    %c0_25 = arith.constant 0 : index
    %44 = vector.load %arg10[%c0_24, %c0_25] : memref<1x128xf32, #tpu.memory_space<vmem>>, vector<1x128xf32>
    tpu.vector_store %arg10[%c0_24, %c0_25], %43 {strides = array<i32>} : memref<1x128xf32, #tpu.memory_space<vmem>>, vector<1x128xf32>,
    return
  }
  func.func @transform_0(%arg0: i32) -> (i32, i32) {
    %c0_i32 = arith.constant 0 : i32
    %c0_i32_0 = arith.constant 0 : i32
    %c0_i32_1 = arith.constant 0 : i32
    return %c0_i32, %c0_i32_0 : i32, i32
  }
  func.func @transform_1(%arg0: i32) -> (i32, i32) {
    %c0_i32 = arith.constant 0 : i32
    %c0_i32_0 = arith.constant 0 : i32
    %c0_i32_1 = arith.constant 0 : i32
    return %c0_i32, %c0_i32_0 : i32, i32
  }
  func.func @transform_2(%arg0: i32) -> (i32, i32) {
    %c0_i32 = arith.constant 0 : i32
    %c0_i32_0 = arith.constant 0 : i32
    %c0_i32_1 = arith.constant 0 : i32
    return %c0_i32, %c0_i32_0 : i32, i32
  }
  func.func @transform_3(%arg0: i32) -> (i32, i32) {
    %c0_i32 = arith.constant 0 : i32
    %c0_i32_0 = arith.constant 0 : i32
    %c0_i32_1 = arith.constant 0 : i32
    return %c0_i32, %c0_i32_0 : i32, i32
  }
  func.func @transform_4(%arg0: i32) -> (i32, i32) {
    %c0_i32 = arith.constant 0 : i32
    %c0_i32_0 = arith.constant 0 : i32
    %c0_i32_1 = arith.constant 0 : i32
    return %c0_i32, %c0_i32_0 : i32, i32
  }
  func.func @transform_5(%arg0: i32) -> (i32, i32) {
    %c0_i32 = arith.constant 0 : i32
    %c0_i32_0 = arith.constant 0 : i32
    %c0_i32_1 = arith.constant 0 : i32
    return %c0_i32, %c0_i32_0 : i32, i32
  }
  func.func @transform_6(%arg0: i32) -> (i32, i32) {
    %c0_i32 = arith.constant 0 : i32
    %c0_i32_0 = arith.constant 0 : i32
    %c0_i32_1 = arith.constant 0 : i32
    return %c0_i32, %c0_i32_0 : i32, i32
  }
  func.func @transform_7(%arg0: i32) -> (i32, i32) {
    %c0_i32 = arith.constant 0 : i32
    %c0_i32_0 = arith.constant 0 : i32
    %c0_i32_1 = arith.constant 0 : i32
    return %c0_i32, %c0_i32_0 : i32, i32
  }
  func.func @transform_8(%arg0: i32) -> (i32, i32) {
    %c0_i32 = arith.constant 0 : i32
    %c0_i32_0 = arith.constant 0 : i32
    %c0_i32_1 = arith.constant 0 : i32
    return %c0_i32, %c0_i32_0 : i32, i32
  }
  func.func @transform_9(%arg0: i32) -> (i32, i32) {
    %c0_i32 = arith.constant 0 : i32
    %c0_i32_0 = arith.constant 0 : i32
    %c0_i32_1 = arith.constant 0 : i32
    return %c0_i32, %c0_i32_0 : i32, i32
  }
}

</mosaic_0001>

<bundles_post_ra>
// kernel: tpu_custom_call.1
= control target key start
LH: loop header
LB: loop body
LE: loop exit
PB: predicated region body
PF: predicated region fallthrough
CT: control target
= control target key end

     0   :  { %s563_s0 = inlined_call_operand.vmem [shape: f32[2,128], index: 0, kind: input, shape index: {}]   ;;  %s564_s1 = inlined_call_operand.vmem [shape: f32[32,2], index: 1, kind: input, shape index: {}]   ;;  %s565_s2 = inlined_call_operand.vmem [shape: f32[32,1], index: 2, kind: input, shape index: {}]   ;;  %s566_s3 = inlined_call_operand.vmem [shape: f32[32,32], index: 3, kind: input, shape index: {}]   ;;  %s567_s4 = inlined_call_operand.vmem [shape: f32[32,1], index: 4, kind: input, shape index: {}]   ;;  %s568_s5 = inlined_call_operand.vmem [shape: f32[32,32], index: 5, kind: input, shape index: {}]   ;;  %s569_s6 = inlined_call_operand.vmem [shape: f32[32,1], index: 6, kind: input, shape index: {}]   ;;  %s570_s7 = inlined_call_operand.vmem [shape: f32[32,1], index: 7, kind: input, shape index: {}]   ;;  %s571_s8 = inlined_call_operand.<no memory space> [shape: f32[1,1], index: 8, kind: input, shape index: {}]   ;;  %s572_s9 = inlined_call_operand.hbm [shape: f32[1,128], index: 9, kind: output, shape index: {}]  }
   0x1   :  { %v14_v0 = vstv %s571_s8 }
   0x2   :  { %15 = vst [vmem:[#allocation2] sm:$0x1] %v14_v0 }
   0x3   :  { %v43_v1 = vld [vmem:[%s564_s1 + $0x18] sm:$0xff]  ;;  %v41_v2 = vld [vmem:[%s564_s1 + $0x8] sm:$0xff]  ;;  %v409_v4 = vmov 0  }
   0x4   :  { %v39_v3 = vld [vmem:[%s565_s2 + $0x18] sm:$0xff]  ;;  %353 = vset.pattern.permute.xlu2 %v409_v4  ;;  %351 = vset.pattern.permute.xlu1 %v409_v4 }
   0x5   :  { %350 = vset.pattern.permute.xlu0 %v409_v4  ;;  %51 = vperm.xlu2 %353, %v41_v2  }
   0x6   :  { %61 = vperm.xlu0 %350, %v43_v1   ;;  %86 = vperm.xlu1 %351, %v39_v3  }
   0x7   :  { %16 = vsyncpa [#allocation4], 0  ;;  %v38_v5 = vld [vmem:[%s565_s2 + $0x10] sm:$0xff]  ;;  %v410_v7 = vmov 1   ;;  %v37_v8 = vld [vmem:[%s565_s2 + $0x8] sm:$0xff]  ;;  %vm150_vm0 = vcmask 261120  }
   0x8   :  { %v42_v6 = vld [vmem:[%s564_s1 + $0x10] sm:$0xff]  ;;  %v40_v9 = vld [vmem:[%s564_s1] sm:$0xff]  ;;  %v270_v14 = vld [vmem:[%s570_s7 + $0x8] sm:$0xff]  ;;  %s322_s17 = sshll.u32 %s572_s9, 4  ;;  %s323_s17 = int_to_ptr.hbm [resolvable:$true] %s322_s17 }
   0x9   :  { %v36_v10 = vld [vmem:[%s565_s2] sm:$0xff]  ;;  %v128_v11 = vld [vmem:[%s567_s4 + $0x10] sm:$0xff]  ;;  %v129_v20 = vld [vmem:[%s567_s4 + $0x18] sm:$0xff] }
   0xa   :  { %v200_v12 = vld [vmem:[%s569_s6] sm:$0xff]  ;;  %v202_v13 = vld [vmem:[%s569_s6 + $0x10] sm:$0xff]  ;;  %v201_v32 = vld [vmem:[%s569_s6 + $0x8] sm:$0xff] }
   0xb   :  { %v306_v15 = vld [vmem:[#allocation2] sm:$0x1]  ;;  %v127_v38 = vld [vmem:[%s567_s4 + $0x8] sm:$0xff]  ;;  %v203_v44 = vld [vmem:[%s569_s6 + $0x18] sm:$0xff] }
   0xc   :  { %v35_v17 = vld [vmem:[%s563_s0] sm:$0x3]  ;;  %v272_v55 = vld [vmem:[%s570_s7 + $0x18] sm:$0xff]  ;;  %v271_v56 = vld [vmem:[%s570_s7 + $0x10] sm:$0xff] }
   0xd   :  { %81 = vperm.xlu2 %353, %v38_v5   ;;  %v64_v21 = vperm.slane %v35_v17, 0  ;;  %v109_v23 = vperm.slane %v35_v17, 1  ;;  %v126_v26 = vld [vmem:[%s567_s4] sm:$0xff]  ;;  %v124_v58 = vld [vmem:[%s566_s3 + $0x10] sm:$0xff]  ;;  %v125_v61 = vld [vmem:[%s566_s3 + $0x18] sm:$0xff] }
   0xe   :  { %56 = vperm.xlu0 %350, %v42_v6   ;;  %352 = vset.pattern.permute.xlu1 %v410_v7  ;;  %v269_v41 = vld [vmem:[%s570_s7] sm:$0xff]  ;;  %v123_v62 = vld [vmem:[%s566_s3 + $0x8] sm:$0xff] }
   0xf   :  { %106 = vperm.xlu1 %352, %v43_v1   ;;  %v122_v59 = vld [vmem:[%s566_s3] sm:$0xff]  ;;  %v197_v17 = vld [vmem:[%s568_s5 + $0x8] sm:$0xff] }
  0x15   :  { %76 = vperm.xlu2 %353, %v37_v8  }
  0x16   :  { %354 = vset.pattern.permute.xlu0 %v410_v7 }
  0x17   :  { %102 = vperm.xlu0 %354, %v42_v6   ;;  %355 = vset.pattern.permute.xlu1 %v409_v4 }
  0x18   :  { %46 = vperm.xlu1 %355, %v40_v9  }
  0x1d   :  { %71 = vperm.xlu2 %353, %v36_v10  }
  0x1f   :  { %94 = vperm.xlu0 %354, %v40_v9  }
  0x20   :  { %356 = vset.pattern.permute.xlu1 %v410_v7 }
  0x21   :  { %98 = vperm.xlu1 %356, %v41_v2  }
  0x25   :  { %142 = vperm.xlu2 %353, %v128_v11  }
  0x27   :  { %358 = vset.pattern.permute.xlu0 %v409_v4 }
  0x28   :  { %137 = vperm.xlu0 %358, %v127_v38  }
  0x29   :  { %357 = vset.pattern.permute.xlu1 %v409_v4 }
  0x2a   :  { %147 = vperm.xlu1 %357, %v129_v20  }
  0x2d   :  { %206 = vperm.xlu2 %353, %v200_v12  }
  0x30   :  { %221 = vperm.xlu0 %358, %v203_v44  }
  0x32   :  { %132 = vperm.xlu1 %357, %v126_v26  }
  0x35   :  { %216 = vperm.xlu2 %353, %v202_v13  }
  0x38   :  { %285 = vperm.xlu0 %358, %v271_v56  }
  0x3a   :  { %211 = vperm.xlu1 %357, %v201_v32  }
  0x3d   :  { %280 = vperm.xlu2 %353, %v270_v14   ;;  %v196_v14 = vld [vmem:[%s568_s5] sm:$0xff] }
  0x42   :  { %275 = vperm.xlu1 %357, %v269_v41  }
  0x45   :  { %309 = vperm.xlu2 %353, %v306_v15   ;;  %v198_v15 = vld [vmem:[%s568_s5 + $0x10] sm:$0xff] }
  0x4a   :  { %290 = vperm.xlu1 %357, %v272_v55  }
  0x5f   :  { %v52_v16 = vpop.permute.xlu2 %51 }
  0x60   :  { %v66_v42 = vmul.f32 %v64_v21, %v52_v16 }
  0x67   :  { %v82_v24 = vpop.permute.xlu2 %81 }
  0x6f   :  { %v77_v33 = vpop.permute.xlu2 %76 }
  0x70   :  { %v90_v50 = vadd.f32 %v77_v33, %v66_v42 }
  0x77   :  { %v72_v47 = vpop.permute.xlu2 %71 }
  0x78   :  { %v62_v18 = vpop.permute.xlu0 %61  ;;  %v87_v19 = vpop.permute.xlu1 %86 }
  0x79   :  { %v68_v22 = vmul.f32 %v64_v21, %v62_v18  ;;  %v199_v18 = vld [vmem:[%s568_s5 + $0x18] sm:$0xff]  ;;  %s411_s5 = smov [#allocation3]  }
  0x7a   :  { %s320_s16 = sshll.u32 %s411_s5, 4  ;;  %s321_s16 = int_to_ptr.vmem [resolvable:$true] %s320_s16 }
  0x7b   :  { %v92_v28 = vadd.f32 %v87_v19, %v68_v22 }
  0x7f   :  { %v143_v3 = vpop.permute.xlu2 %142 }
  0x80   :  { %v57_v25 = vpop.permute.xlu0 %56 }
  0x81   :  { %v107_v27 = vpop.permute.xlu1 %106  ;;  %v67_v31 = vmul.f32 %v64_v21, %v57_v25 }
  0x82   :  { %v113_v29 = vmul.f32 %v109_v23, %v107_v27 }
  0x83   :  { %v91_v35 = vadd.f32 %v82_v24, %v67_v31 }
  0x84   :  { %v117_v30 = vadd.f32 %v113_v29, %v92_v28 }
  0x86   :  { %359 = vtanh.f32 %v117_v30 }
  0x87   :  { %v207_v19 = vpop.permute.xlu2 %206 }
  0x89   :  { %v103_v34 = vpop.permute.xlu0 %102 }
  0x8a   :  { %v112_v36 = vmul.f32 %v109_v23, %v103_v34  ;;  %v47_v37 = vpop.permute.xlu1 %46 }
  0x8b   :  { %v65_v43 = vmul.f32 %v64_v21, %v47_v37 }
  0x8c   :  { %v360_v39 = vpop.eup %359  ;;  %v116_v40 = vadd.f32 %v112_v36, %v91_v35 }
  0x8d   :  { %175 = vmatpush.msra.mxu0 %v360_v39  ;;  %339 = vmatpush.msra.mxu2 %v360_v39  ;;  %v89_v51 = vadd.f32 %v72_v47, %v65_v43 }
  0x8e   :  { %361 = vtanh.f32 %v116_v40 }
  0x8f   :  { %v217_v24 = vpop.permute.xlu2 %216 }
  0x91   :  { %v95_v45 = vpop.permute.xlu0 %94 }
  0x92   :  { %v110_v46 = vmul.f32 %v109_v23, %v95_v45 }
  0x93   :  { %v99_v48 = vpop.permute.xlu1 %98 }
  0x94   :  { %v362_v49 = vpop.eup %361  ;;  %v111_v52 = vmul.f32 %v109_v23, %v99_v48  ;;  %v114_v53 = vadd.f32 %v110_v46, %v89_v51 }
  0x95   :  { %176 = vmatpush.msra.mxu0 %v362_v49  ;;  %340 = vmatpush.msra.mxu2 %v362_v49 }
  0x96   :  { %v115_v54 = vadd.f32 %v111_v52, %v90_v50 }
  0x97   :  { %v281_v34 = vpop.permute.xlu2 %280 }
  0x98   :  { %363 = vtanh.f32 %v115_v54 }
  0x99   :  { %365 = vtanh.f32 %v114_v53 }
  0x9a   :  { %v138_v4 = vpop.permute.xlu0 %137 }
  0x9c   :  { %v148_v1 = vpop.permute.xlu1 %147 }
  0x9e   :  { %v364_v57 = vpop.eup %363 }
  0x9f   :  { %177 = vmatpush.msra.mxu0 %v364_v57  ;;  %341 = vmatpush.msra.mxu2 %v364_v57  ;;  %v366_v60 = vpop.eup %365  ;;  %v310_v50 = vpop.permute.xlu2 %309 }
  0xa0   :  { %v312_v52 = vperm.slane %v310_v50, 0 }
  0xa1   :  { %178 = vmatpush.msra.mxu0 %v366_v60  ;;  %342 = vmatpush.msra.mxu2 %v366_v60 }
  0xa2   :  { %333 = vmatmul.msk.f32.vlgmr.msra.gmra.mxu2 %vm150_vm0, %v124_v58  ;;  %331 = vmatmul.msk.f32.vlgmr.msra.gmra.mxu0 %vm150_vm0, %v122_v59  ;;  %v222_v28 = vpop.permute.xlu0 %221 }
  0xa4   :  { %v133_v9 = vpop.permute.xlu1 %132 }
  0xaa   :  { %334 = vmatmul.msk.f32.gmra.mxu2 %vm150_vm0, %v125_v61  ;;  %332 = vmatmul.msk.f32.gmra.mxu0 %vm150_vm0, %v123_v62  ;;  %v286_v39 = vpop.permute.xlu0 %285 }
  0xac   :  { %v212_v21 = vpop.permute.xlu1 %211 }
  0xb4   :  { %v276_v29 = vpop.permute.xlu1 %275 }
  0xbc   :  { %v291_v42 = vpop.permute.xlu1 %290 }
 0x11f   :  { %v180_v63 = vpop.f32.mrf.mxu0 }
 0x120   :  { %v181_v10 = vadd.f32 %v180_v63, %v133_v9 }
 0x125   :  { %v186_v0 = vpop.f32.mrf.mxu2 }
 0x126   :  { %v187_v5 = vadd.f32 %v186_v0, %v143_v3 }
 0x127   :  { %v183_v2 = vpop.f32.mrf.mxu0 }
 0x128   :  { %v184_v8 = vadd.f32 %v183_v2, %v138_v4 }
 0x12d   :  { %v189_v6 = vpop.f32.mrf.mxu2 }
 0x12e   :  { %v190_v7 = vadd.f32 %v189_v6, %v148_v1 }
 0x130   :  { %367 = vtanh.f32 %v190_v7 }
 0x131   :  { %369 = vtanh.f32 %v187_v5 }
 0x132   :  { %371 = vtanh.f32 %v184_v8 }
 0x133   :  { %373 = vtanh.f32 %v181_v10 }
 0x136   :  { %v368_v11 = vpop.eup %367 }
 0x137   :  { %v370_v12 = vpop.eup %369  ;;  %248 = vmatpush.msra.mxu1 %v368_v11  ;;  %343 = vmatpush.msra.mxu3 %v368_v11 }
 0x138   :  { %v372_v13 = vpop.eup %371 }
 0x139   :  { %249 = vmatpush.msra.mxu1 %v370_v12  ;;  %344 = vmatpush.msra.mxu3 %v370_v12  ;;  %v374_v16 = vpop.eup %373 }
 0x13b   :  { %250 = vmatpush.msra.mxu1 %v372_v13  ;;  %345 = vmatpush.msra.mxu3 %v372_v13 }
 0x13d   :  { %251 = vmatpush.msra.mxu1 %v374_v16  ;;  %346 = vmatpush.msra.mxu3 %v374_v16 }
 0x13e   :  { %335 = vmatmul.msk.f32.vlgmr.msra.gmra.mxu1 %vm150_vm0, %v196_v14  ;;  %337 = vmatmul.msk.f32.vlgmr.msra.gmra.mxu3 %vm150_vm0, %v198_v15 }
 0x146   :  { %336 = vmatmul.msk.f32.gmra.mxu1 %vm150_vm0, %v197_v17  ;;  %338 = vmatmul.msk.f32.gmra.mxu3 %vm150_vm0, %v199_v18 }
 0x1bb   :  { %v253_v20 = vpop.f32.mrf.mxu1 }
 0x1bc   :  { %v254_v22 = vadd.f32 %v253_v20, %v207_v19 }
 0x1be   :  { %375 = vtanh.f32 %v254_v22 }
 0x1c1   :  { %v259_v23 = vpop.f32.mrf.mxu3 }
 0x1c2   :  { %v260_v26 = vadd.f32 %v259_v23, %v217_v24 }
 0x1c3   :  { %v256_v25 = vpop.f32.mrf.mxu1 }
 0x1c4   :  { %v257_v27 = vadd.f32 %v256_v25, %v212_v21  ;;  %v376_v31 = vpop.eup %375 }
 0x1c5   :  { %v293_v35 = vmul.f32 %v376_v31, %v276_v29 }
 0x1c6   :  { %377 = vtanh.f32 %v257_v27 }
 0x1c7   :  { %379 = vtanh.f32 %v260_v26 }
 0x1c9   :  { %v262_v30 = vpop.f32.mrf.mxu3 }
 0x1ca   :  { %v263_v32 = vadd.f32 %v262_v30, %v222_v28 }
 0x1cc   :  { %v378_v33 = vpop.eup %377  ;;  %381 = vtanh.f32 %v263_v32 }
 0x1cd   :  { %v294_v36 = vmul.f32 %v378_v33, %v281_v34  ;;  %v380_v37 = vpop.eup %379 }
 0x1ce   :  { %v295_v40 = vmul.f32 %v380_v37, %v286_v39 }
 0x1cf   :  { %v297_v38 = vadd.f32 %v294_v36, %v293_v35 }
 0x1d1   :  { %v298_v44 = vadd.f32 %v297_v38, %v295_v40 }
 0x1d2   :  { %v382_v41 = vpop.eup %381 }
 0x1d3   :  { %v296_v43 = vmul.f32 %v382_v41, %v291_v42 }
 0x1d5   :  { %v299_v45 = vadd.f32 %v298_v44, %v296_v43 }
 0x1d7   :  { %v300_v46 = vrot.slane %v299_v45, 4 }
 0x1d9   :  { %v301_v47 = vadd.f32 %v300_v46, %v299_v45 }
 0x1db   :  { %v302_v48 = vrot.slane %v301_v47, 2 }
 0x1dd   :  { %v303_v49 = vadd.f32 %v302_v48, %v301_v47 }
 0x1df   :  { %v304_v51 = vrot.slane %v303_v49, 1 }
 0x1e1   :  { %v305_v53 = vadd.f32 %v304_v51, %v303_v49 }
 0x1e3   :  { %v313_v54 = vadd.f32 %v312_v52, %v305_v53 }
 0x1e5   :  { %314 = vst [vmem:[#allocation3] sm:$0x1] %v313_v54 }
 0x1e6   :  { %325 = dma.vmem_to_hbm [thread:$0]  %s321_s16, 16, %s323_s17, [#allocation4]  }
 0x1e7   :  { %407 = dma.done.wait [#allocation4], 16  }
 0x1e8   :  { %408 = vsyncadd [#allocation4], 4294967280 }
 0x1e9   :  { %330 = vsyncpa [#allocation4], 1 }

</bundles_post_ra>
